<compile_context>
chip_gen: v5e
topology: v5e:2x2
jax: 0.10.0
libtpu: 0.0.40
codegen_flags: <defaults>
</compile_context>

<pallas_src>
from functools import partial

import numpy as np
import jax
import jax.numpy as jnp
from jax.experimental import pallas as pl
from jax.experimental.pallas import tpu as pltpu


# -----------------------------------------------------------------------------
# Fused kernel: one full ODE solver step (euler or rk4) for ALL batch elements.
# State layout: (H, NWC) with NWC = N*W*C packed into the lane dimension.
# -----------------------------------------------------------------------------
def _fused_ode_step_kernel(dt_ref, y_ref, w1_ref, b1_ref, w2_ref, b2_ref,
                           out_ref, pad_ref, *, H, NWC, solver, compute_dtype):
    # dt_ref : (1,)              SMEM scalar, dt = t[1] - t[0]
    # y_ref  : (H, NWC)          whole batch, lanes = (batch, width, channel)
    # w*_ref : (NWC, 3*NWC)      block-diagonal banded conv weights, dy taps
    #                            concatenated along the output (lane) dimension
    # b*_ref : (1, NWC)          bias tiled across batch and width (float32)
    # out_ref: (H, NWC)
    # pad_ref: VMEM scratch (H+2, NWC) - row-halo buffer shared by both convs/all stages

    # Zero ONLY the two halo rows (rows 1..H are fully overwritten before every use).
    # Kept unconditional: it must not be gated on a program_id under any future
    # "parallel" grid split (each core has its own scratch).
    zrow = jnp.zeros((1, NWC), compute_dtype)
    pad_ref[0:1, :] = zrow
    pad_ref[H + 1:H + 2, :] = zrow

    b1 = b1_ref[...]                      # (1, NWC) float32 - hoisted out of all loops
    b2 = b2_ref[...]

    def conv(w_ref, bias):
        # 3x3 SAME conv as ONE MXU matmul on the aligned halo scratch:
        #   P = pad @ [W_dy0 | W_dy1 | W_dy2]        (H+2, 3*NWC), f32 accumulation
        #   out = P[0:H, band0] + P[1:H+1, band1] + P[2:H+2, band2] + bias
        # dx taps + W-boundary zeroing + batch block-diagonal live in the weights.
        p = jnp.dot(pad_ref[...], w_ref[...], preferred_element_type=jnp.float32)
        return (p[0:H, 0:NWC]
                + p[1:H + 1, NWC:2 * NWC]
                + p[2:H + 2, 2 * NWC:3 * NWC]
                + bias)

    def f(y):  # y: (H, NWC) float32 -> dy/dt (H, NWC) float32
        pad_ref[1:H + 1, :] = y.astype(compute_dtype)
        hidden = jnp.maximum(conv(w1_ref, b1), 0.0)
        pad_ref[1:H + 1, :] = hidden.astype(compute_dtype)
        return conv(w2_ref, b2)

    dt = dt_ref[0].astype(jnp.float32)
    y0 = y_ref[...].astype(jnp.float32)

    if solver == "euler":
        y1 = y0 + dt * f(y0)
    elif solver == "rk4":
        # torchdiffeq's fixed-grid 'rk4' step (3/8 rule); odefunc is autonomous so the
        # intermediate time arguments are irrelevant.
        k1 = f(y0)
        k2 = f(y0 + dt * (k1 / 3.0))
        k3 = f(y0 + dt * (k2 - k1 / 3.0))
        k4 = f(y0 + dt * (k1 - k2 + k3))
        y1 = y0 + (k1 + 3.0 * (k2 + k3) + k4) * (dt * 0.125)
    else:
        raise ValueError(f"unsupported solver: {solver}")

    out_ref[...] = y1.astype(out_ref.dtype)


# -----------------------------------------------------------------------------
# Wrapper: NCHW <-> lane-dense (H, N*W*C) conversion + single pallas_call.
# -----------------------------------------------------------------------------
@partial(jax.jit, static_argnames=("solver", "compute_dtype"))
def ode_block_forward(x_nchw, t, params, *, solver="euler",
                      compute_dtype=jnp.bfloat16):
    """ODEblock.forward: one fixed-grid solver step from t[0] to t[1] (== odeint(...)[1])."""
    w1e, b1e, w2e, b2e = params
    N, C, H, W = x_nchw.shape
    NWC = N * W * C

    dt = (t[1] - t[0]).astype(jnp.float32).reshape(1)
    # NCHW -> (H, N, W, C) -> (H, N*W*C): batch packed into lanes.
    y0 = jnp.transpose(x_nchw, (2, 0, 3, 1)).reshape(H, NWC)

    n_stages = 4 if solver == "rk4" else 1
    itemsize = jnp.dtype(compute_dtype).itemsize
    # True conv FLOPs (not counting the zero band of the expanded weights).
    cost = pl.CostEstimate(
        flops=n_stages * 2 * (2 * 9 * C * C * H * W * N),
        transcendentals=0,
        bytes_accessed=(2 * H * NWC * x_nchw.dtype.itemsize          # y0 + out
                        + 2 * NWC * 3 * NWC * itemsize               # weights
                        + 2 * NWC * 4),                              # biases
    )

    kernel = partial(_fused_ode_step_kernel, H=H, NWC=NWC,
                     solver=solver, compute_dtype=compute_dtype)

    vmem_spec = pl.BlockSpec(memory_space=pltpu.MemorySpace.VMEM)
    y1 = pl.pallas_call(
        kernel,
        out_shape=jax.ShapeDtypeStruct((H, NWC), x_nchw.dtype),
        in_specs=[
            pl.BlockSpec(memory_space=pltpu.MemorySpace.SMEM),   # dt scalar
            vmem_spec,                                           # y0 slab
            vmem_spec,                                           # conv1 banded weights
            vmem_spec,                                           # conv1 bias (tiled)
            vmem_spec,                                           # conv2 banded weights
            vmem_spec,                                           # conv2 bias (tiled)
        ],
        out_specs=vmem_spec,
        scratch_shapes=[pltpu.VMEM((H + 2, NWC), compute_dtype)],
        compiler_params=pltpu.CompilerParams(vmem_limit_bytes=32 * 1024 * 1024),
        cost_estimate=cost,
    )(dt, y0, w1e, b1e, w2e, b2e)

    # (H, N*W*C) -> (H, N, W, C) -> NCHW
    return jnp.transpose(y1.reshape(H, N, W, C), (1, 3, 0, 2))


# -----------------------------------------------------------------------------
# Parameter construction: synthetic odefunc weights + banded-matrix expansion.
# -----------------------------------------------------------------------------
def init_odefunc_params(key, channels):
    """Two 3x3 convs, C->C, cross-correlation weights laid out (kh, kw, Cin, Cout)."""
    k1, k2, k3, k4 = jax.random.split(key, 4)
    w1 = 0.1 * jax.random.normal(k1, (3, 3, channels, channels), jnp.float32)
    w2 = 0.1 * jax.random.normal(k2, (3, 3, channels, channels), jnp.float32)
    b1 = 0.05 * jax.random.normal(k3, (channels,), jnp.float32)
    b2 = 0.05 * jax.random.normal(k4, (channels,), jnp.float32)
    return w1, b1, w2, b2


def _expand_conv_weight(w, W, N, compute_dtype):
    """(3,3,Cin,Cout) -> (N*W*C, 3*N*W*C) block-diagonal banded weights.

    For each dy tap, builds the (W*C, W*C) banded matrix
        M[dy, wi*C+ci, wo*C+co] = w[dy, wi-wo+1, ci, co]   (zero outside the W band),
    block-diagonalizes it over the batch (kron with I_N), and concatenates the three
    dy taps along the output dimension so the kernel needs a single matmul per conv.
    Built once on the host (numpy) at setup time.
    """
    w = np.asarray(w, np.float32)
    C = w.shape[2]
    WC = W * C
    bands = []
    for dy in range(3):
        M = np.zeros((WC, WC), np.float32)
        for dx in range(3):
            for wo in range(W):
                wi = wo + dx - 1
                if 0 <= wi < W:
                    M[wi * C:(wi + 1) * C, wo * C:(wo + 1) * C] = w[dy, dx]
        bands.append(np.kron(np.eye(N, dtype=np.float32), M))      # (NWC, NWC)
    big = np.concatenate(bands, axis=1)                            # (NWC, 3*NWC)
    return jnp.asarray(big, dtype=compute_dtype)


def prepare_params(raw_params, W, N, compute_dtype=jnp.bfloat16):
    """Expand conv weights to the block-diagonal banded form; biases stay f32."""
    w1, b1, w2, b2 = raw_params
    return (_expand_conv_weight(w1, W, N, compute_dtype),
            jnp.asarray(np.tile(np.asarray(b1, np.float32), N * W))[None, :],
            _expand_conv_weight(w2, W, N, compute_dtype),
            jnp.asarray(np.tile(np.asarray(b2, np.float32), N * W))[None, :])


# -----------------------------------------------------------------------------
# Pure-JAX reference (for correctness checking only).
# -----------------------------------------------------------------------------
def _ref_odefunc(y_nhwc, raw_params):
    w1, b1, w2, b2 = raw_params
    dn = ("NHWC", "HWIO", "NHWC")
    h = jax.lax.conv_general_dilated(y_nhwc, w1, (1, 1), "SAME", dimension_numbers=dn)
    h = jnp.maximum(h + b1, 0.0)
    o = jax.lax.conv_general_dilated(h, w2, (1, 1), "SAME", dimension_numbers=dn)
    return o + b2


def _ref_forward(x_nchw, t, raw_params, solver):
    y0 = jnp.transpose(x_nchw, (0, 2, 3, 1))
    dt = (t[1] - t[0]).astype(jnp.float32)
    f = lambda y: _ref_odefunc(y, raw_params)
    if solver == "euler":
        y1 = y0 + dt * f(y0)
    else:
        k1 = f(y0)
        k2 = f(y0 + dt * (k1 / 3.0))
        k3 = f(y0 + dt * (k2 - k1 / 3.0))
        k4 = f(y0 + dt * (k1 - k2 + k3))
        y1 = y0 + (k1 + 3.0 * (k2 + k3) + k4) * (dt * 0.125)
    return jnp.transpose(y1, (0, 3, 1, 2))


if __name__ == "__main__":
    key = jax.random.PRNGKey(0)
    kx, kp = jax.random.split(key)

    N, C, H, W = 2, 4, 16, 16
    x = jax.random.normal(kx, (N, C, H, W), jnp.float32)   # PyTorch NCHW input
    t = jnp.array([0.0, 1.0], jnp.float32)                 # ODEblock default t

    raw_params = init_odefunc_params(kp, C)
    params_f32 = prepare_params(raw_params, W, N, compute_dtype=jnp.float32)
    params_bf16 = prepare_params(raw_params, W, N, compute_dtype=jnp.bfloat16)  # default path

    for solver in ("euler", "rk4"):                         # module default is 'euler'
        ref = jax.block_until_ready(_ref_forward(x, t, raw_params, solver))

        # f32 operands: tight parity with the PyTorch/XLA reference.
        out32 = ode_block_forward(x, t, params_f32, solver=solver,
                                  compute_dtype=jnp.float32)
        out32 = jax.block_until_ready(out32)
        assert out32.shape == (N, C, H, W)
        err32 = float(jnp.max(jnp.abs(out32 - ref)))
        assert jnp.allclose(out32, ref, atol=1e-2, rtol=1e-2), f"{solver} f32: max err {err32}"

        # bf16 operands (default): MXU-native, f32 accumulation; state is re-quantized
        # to bf16 before every matmul of every stage, so parity vs f32 is ~1e-2 level.
        out16 = ode_block_forward(x, t, params_bf16, solver=solver)
        out16 = jax.block_until_ready(out16)
        err16 = float(jnp.max(jnp.abs(out16 - ref)))
        assert jnp.allclose(out16, ref, atol=5e-2, rtol=5e-2), f"{solver} bf16: max err {err16}"

    print("KERNEL_OK")
</pallas_src>

<mosaic_0001>
module attributes {stable_mosaic.version = 11 : i64} {
  func.func @_fused_ode_step_kernel(%arg0: memref<1xf32, #tpu.memory_space<smem>>, %arg1: memref<16x128xf32, #tpu.memory_space<vmem>>, %arg2: memref<128x384xf32, #tpu.memory_space<vmem>>, %arg3: memref<1x128xf32, #tpu.memory_space<vmem>>, %arg4: memref<128x384xf32, #tpu.memory_space<vmem>>, %arg5: memref<1x128xf32, #tpu.memory_space<vmem>>, %arg6: memref<16x128xf32, #tpu.memory_space<vmem>>, %arg7: memref<18x128xf32, #tpu.memory_space<vmem>>) attributes {dimension_semantics = [], scalar_prefetch = 0 : i64, scratch_operands = 1 : i64, tpu.core_type = #tpu.core_type<tc>} {
    %cst = arith.constant 0.000000e+00 : f32
    %0 = vector.broadcast %cst : f32 to vector<1x128xf32>
    %c0 = arith.constant 0 : index
    %c0_0 = arith.constant 0 : index
    %1 = vector.load %arg7[%c0, %c0_0] : memref<18x128xf32, #tpu.memory_space<vmem>>, vector<1x128xf32>
    tpu.vector_store %arg7[%c0, %c0_0], %0 {strides = array<i32>} : memref<18x128xf32, #tpu.memory_space<vmem>>, vector<1x128xf32>,
    %c17 = arith.constant 17 : index
    %c0_1 = arith.constant 0 : index
    %2 = vector.load %arg7[%c17, %c0_1] : memref<18x128xf32, #tpu.memory_space<vmem>>, vector<1x128xf32>
    tpu.vector_store %arg7[%c17, %c0_1], %0 {strides = array<i32>} : memref<18x128xf32, #tpu.memory_space<vmem>>, vector<1x128xf32>,
    %c0_2 = arith.constant 0 : index
    %c0_3 = arith.constant 0 : index
    %3 = vector.load %arg3[%c0_2, %c0_3] : memref<1x128xf32, #tpu.memory_space<vmem>>, vector<1x128xf32>
    %c0_4 = arith.constant 0 : index
    %c0_5 = arith.constant 0 : index
    %4 = vector.load %arg5[%c0_4, %c0_5] : memref<1x128xf32, #tpu.memory_space<vmem>>, vector<1x128xf32>
    %c0_6 = arith.constant 0 : index
    %5 = memref.load %arg0[%c0_6] : memref<1xf32, #tpu.memory_space<smem>>
    %c0_7 = arith.constant 0 : index
    %c0_8 = arith.constant 0 : index
    %6 = vector.load %arg1[%c0_7, %c0_8] : memref<16x128xf32, #tpu.memory_space<vmem>>, vector<16x128xf32>
    %c1 = arith.constant 1 : index
    %c0_9 = arith.constant 0 : index
    %7 = vector.load %arg7[%c1, %c0_9] : memref<18x128xf32, #tpu.memory_space<vmem>>, vector<16x128xf32>
    tpu.vector_store %arg7[%c1, %c0_9], %6 {strides = array<i32>} : memref<18x128xf32, #tpu.memory_space<vmem>>, vector<16x128xf32>,
    %c0_10 = arith.constant 0 : index
    %c0_11 = arith.constant 0 : index
    %8 = vector.load %arg7[%c0_10, %c0_11] : memref<18x128xf32, #tpu.memory_space<vmem>>, vector<18x128xf32>
    %c0_12 = arith.constant 0 : index
    %c0_13 = arith.constant 0 : index
    %9 = vector.load %arg2[%c0_12, %c0_13] : memref<128x384xf32, #tpu.memory_space<vmem>>, vector<128x384xf32>
    %cst_14 = arith.constant dense<0.000000e+00> : vector<18x384xf32>
    %10 = tpu.matmul %8, %9, %cst_14 {dimension_numbers = #tpu.dot_dimension_numbers<[1], [0], [0], [1], [0, 0, 1, 1], [], []>} : vector<18x128xf32>, vector<128x384xf32>, vector<18x384xf32> -> vector<18x384xf32>
    %11 = vector.extract_strided_slice %10 {offsets = [0, 0], sizes = [16, 128], strides = [1, 1]} : vector<18x384xf32> to vector<16x128xf32>
    %12 = vector.extract_strided_slice %10 {offsets = [1, 128], sizes = [16, 128], strides = [1, 1]} : vector<18x384xf32> to vector<16x128xf32>
    %13 = arith.addf %11, %12 : vector<16x128xf32>
    %14 = vector.extract_strided_slice %10 {offsets = [2, 256], sizes = [16, 128], strides = [1, 1]} : vector<18x384xf32> to vector<16x128xf32>
    %15 = arith.addf %13, %14 : vector<16x128xf32>
    %16 = vector.broadcast %3 : vector<1x128xf32> to vector<16x128xf32>
    %17 = arith.addf %15, %16 : vector<16x128xf32>
    %cst_15 = arith.constant 0.000000e+00 : f32
    %18 = vector.broadcast %cst_15 : f32 to vector<16x128xf32>
    %19 = arith.maximumf %17, %18 : vector<16x128xf32>
    %c1_16 = arith.constant 1 : index
    %c0_17 = arith.constant 0 : index
    %20 = vector.load %arg7[%c1_16, %c0_17] : memref<18x128xf32, #tpu.memory_space<vmem>>, vector<16x128xf32>
    tpu.vector_store %arg7[%c1_16, %c0_17], %19 {strides = array<i32>} : memref<18x128xf32, #tpu.memory_space<vmem>>, vector<16x128xf32>,
    %c0_18 = arith.constant 0 : index
    %c0_19 = arith.constant 0 : index
    %21 = vector.load %arg7[%c0_18, %c0_19] : memref<18x128xf32, #tpu.memory_space<vmem>>, vector<18x128xf32>
    %c0_20 = arith.constant 0 : index
    %c0_21 = arith.constant 0 : index
    %22 = vector.load %arg4[%c0_20, %c0_21] : memref<128x384xf32, #tpu.memory_space<vmem>>, vector<128x384xf32>
    %cst_22 = arith.constant dense<0.000000e+00> : vector<18x384xf32>
    %23 = tpu.matmul %21, %22, %cst_22 {dimension_numbers = #tpu.dot_dimension_numbers<[1], [0], [0], [1], [0, 0, 1, 1], [], []>} : vector<18x128xf32>, vector<128x384xf32>, vector<18x384xf32> -> vector<18x384xf32>
    %24 = vector.extract_strided_slice %23 {offsets = [0, 0], sizes = [16, 128], strides = [1, 1]} : vector<18x384xf32> to vector<16x128xf32>
    %25 = vector.extract_strided_slice %23 {offsets = [1, 128], sizes = [16, 128], strides = [1, 1]} : vector<18x384xf32> to vector<16x128xf32>
    %26 = arith.addf %24, %25 : vector<16x128xf32>
    %27 = vector.extract_strided_slice %23 {offsets = [2, 256], sizes = [16, 128], strides = [1, 1]} : vector<18x384xf32> to vector<16x128xf32>
    %28 = arith.addf %26, %27 : vector<16x128xf32>
    %29 = vector.broadcast %4 : vector<1x128xf32> to vector<16x128xf32>
    %30 = arith.addf %28, %29 : vector<16x128xf32>
    %31 = vector.broadcast %5 : f32 to vector<16x128xf32>
    %32 = arith.mulf %31, %30 : vector<16x128xf32>
    %33 = arith.addf %6, %32 : vector<16x128xf32>
    %c0_23 = arith.constant 0 : index
    %c0_24 = arith.constant 0 : index
    %34 = vector.load %arg6[%c0_23, %c0_24] : memref<16x128xf32, #tpu.memory_space<vmem>>, vector<16x128xf32>
    tpu.vector_store %arg6[%c0_23, %c0_24], %33 {strides = array<i32>} : memref<16x128xf32, #tpu.memory_space<vmem>>, vector<16x128xf32>,
    return
  }
}

</mosaic_0001>

<bundles_post_ra>
// kernel: ode_block_forward.1
= control target key start
LH: loop header
LB: loop body
LE: loop exit
PB: predicated region body
PF: predicated region fallthrough
CT: control target
= control target key end

     0   :  { %12 = vsyncpa [#allocation5], 0  ;;  %s445_s24 = smov [#allocation4]   ;;  %s446_s26 = smov 384   ;;  %s700_s0 = inlined_call_operand.<no memory space> [shape: f32[1], index: 0, kind: input, shape index: {}]   ;;  %s701_s1 = inlined_call_operand.vmem [shape: f32[16,128], index: 1, kind: input, shape index: {}]   ;;  %s702_s2 = inlined_call_operand.vmem [shape: f32[128,384], index: 2, kind: input, shape index: {}]   ;;  %s703_s3 = inlined_call_operand.vmem [shape: f32[1,128], index: 3, kind: input, shape index: {}]   ;;  %s704_s4 = inlined_call_operand.hbm [shape: f32[128,384], index: 4, kind: input, shape index: {}]   ;;  %s705_s5 = inlined_call_operand.vmem [shape: f32[1,128], index: 5, kind: input, shape index: {}]   ;;  %s706_s6 = inlined_call_operand.vmem [shape: f32[16,128], index: 6, kind: output, shape index: {}]  }
   0x1   :  { %s25_s23 = sshll.u32 %s704_s4, 4  ;;  %s27_s25 = sshll.u32 %s445_s24, 4  ;;  %s26_s23 = int_to_ptr.hbm [resolvable:$true] %s25_s23  ;;  %s28_s25 = int_to_ptr.vmem [resolvable:$true] %s27_s25 }
   0x2   :  { %s447_s27 = smov 24  }
   0x3   :  { %33 = dma.hbm_to_vmem [thread:$0]  %s26_s23, 6144, %s28_s25, [#allocation5], %s446_s26, %s446_s26, %s447_s27  }
   0x4   :  { %443 = dma.done.wait [#allocation5], 6144  }
   0x5   :  { %444 = vsyncadd [#allocation5], 4294961152  ;;  %v448_v0 = vmov 0.0   ;;  %v98_v1 = vld [vmem:[%s702_s2 + $0x170] sm:$0xff]  ;;  %v99_v2 = vld [vmem:[%s702_s2 + $0x178] sm:$0xff]  ;;  %vm180_vm0 = vcmask 1046528  }
   0x6   :  { %40 = vst [vmem:[#allocation2] sm:$0x1] %v448_v0  ;;  %v95_v3 = vld [vmem:[%s702_s2 + $0x158] sm:$0xff]  ;;  %125 = vmatpush.msra.mxu1 %v98_v1  ;;  %151 = vmatpush.msra.mxu2 %v99_v2  ;;  %v96_v4 = vld [vmem:[%s702_s2 + $0x160] sm:$0xff]  ;;  %v93_v6 = vld [vmem:[%s702_s2 + $0x148] sm:$0xff]  ;;  %vm193_vm1 = vcmask 1045504  }
   0x7   :  { %41 = vst [vmem:[#allocation2 + $0x11] sm:$0x1] %v448_v0  ;;  %v92_v5 = vld [vmem:[%s702_s2 + $0x140] sm:$0xff]  ;;  %v89_v7 = vld [vmem:[%s702_s2 + $0x128] sm:$0xff]  ;;  %v90_v8 = vld [vmem:[%s702_s2 + $0x130] sm:$0xff] }
   0x8   :  { %126 = vmatpush.msra.mxu1 %v95_v3  ;;  %152 = vmatpush.msra.mxu2 %v96_v4  ;;  %v97_v9 = vld [vmem:[%s702_s2 + $0x168] sm:$0xff]  ;;  %v94_v10 = vld [vmem:[%s702_s2 + $0x150] sm:$0xff]  ;;  %v87_v12 = vld [vmem:[%s702_s2 + $0x118] sm:$0xff] }
   0x9   :  { %v86_v11 = vld [vmem:[%s702_s2 + $0x110] sm:$0xff]  ;;  %100 = vmatpush.msra.mxu0 %v97_v9  ;;  %v91_v13 = vld [vmem:[%s702_s2 + $0x138] sm:$0xff]  ;;  %v84_v15 = vld [vmem:[%s702_s2 + $0x100] sm:$0xff] }
   0xa   :  { %127 = vmatpush.msra.mxu1 %v92_v5  ;;  %153 = vmatpush.msra.mxu2 %v93_v6  ;;  %v83_v14 = vld [vmem:[%s702_s2 + $0xf8] sm:$0xff]  ;;  %v88_v16 = vld [vmem:[%s702_s2 + $0x120] sm:$0xff]  ;;  %v81_v18 = vld [vmem:[%s702_s2 + $0xe8] sm:$0xff] }
   0xb   :  { %101 = vmatpush.msra.mxu0 %v94_v10  ;;  %v80_v17 = vld [vmem:[%s702_s2 + $0xe0] sm:$0xff]  ;;  %v85_v19 = vld [vmem:[%s702_s2 + $0x108] sm:$0xff]  ;;  %v78_v21 = vld [vmem:[%s702_s2 + $0xd0] sm:$0xff] }
   0xc   :  { %128 = vmatpush.msra.mxu1 %v89_v7  ;;  %154 = vmatpush.msra.mxu2 %v90_v8  ;;  %v77_v20 = vld [vmem:[%s702_s2 + $0xc8] sm:$0xff]  ;;  %v82_v22 = vld [vmem:[%s702_s2 + $0xf0] sm:$0xff]  ;;  %v75_v24 = vld [vmem:[%s702_s2 + $0xb8] sm:$0xff] }
   0xd   :  { %102 = vmatpush.msra.mxu0 %v91_v13  ;;  %v74_v23 = vld [vmem:[%s702_s2 + $0xb0] sm:$0xff]  ;;  %v562_v25 = vld [vmem:[%s701_s1] sm:$0xff]  ;;  %v71_v26 = vld [vmem:[%s702_s2 + $0x98] sm:$0xff] }
   0xe   :  { %129 = vmatpush.msra.mxu1 %v86_v11  ;;  %155 = vmatpush.msra.mxu2 %v87_v12  ;;  %v79_v27 = vld [vmem:[%s702_s2 + $0xd8] sm:$0xff]  ;;  %47 = vst [vmem:[#allocation2 + $0x1] sm:$0xff] %v562_v25  ;;  %v72_v28 = vld [vmem:[%s702_s2 + $0xa0] sm:$0xff]  ;;  %v577_v29 = vld [vmem:[%s701_s1 + $0x8] sm:$0xff] }
   0xf   :  { %103 = vmatpush.msra.mxu0 %v88_v16  ;;  %v260_v30 = vld [vmem:[#allocation4 + $0x168] sm:$0xff]  ;;  %48 = vst [vmem:[#allocation2 + $0x9] sm:$0xff] %v577_v29  ;;  %v257_v32 = vld [vmem:[#allocation4 + $0x150] sm:$0xff]  ;;  %v254_v36 = vld [vmem:[#allocation4 + $0x138] sm:$0xff] }
  0x10   :  { %130 = vmatpush.msra.mxu1 %v83_v14  ;;  %156 = vmatpush.msra.mxu2 %v84_v15  ;;  %v76_v31 = vld [vmem:[%s702_s2 + $0xc0] sm:$0xff]  ;;  %v69_v34 = vld [vmem:[%s702_s2 + $0x88] sm:$0xff]  ;;  %v66_v38 = vld [vmem:[%s702_s2 + $0x70] sm:$0xff] }
  0x11   :  { %104 = vmatpush.msra.mxu0 %v85_v19  ;;  %v68_v33 = vld [vmem:[%s702_s2 + $0x80] sm:$0xff]  ;;  %263 = vmatpush.msra.mxu3 %v260_v30  ;;  %v73_v35 = vld [vmem:[%s702_s2 + $0xa8] sm:$0xff]  ;;  %v70_v39 = vld [vmem:[%s702_s2 + $0x90] sm:$0xff] }
  0x12   :  { %131 = vmatpush.msra.mxu1 %v80_v17  ;;  %157 = vmatpush.msra.mxu2 %v81_v18  ;;  %v65_v37 = vld [vmem:[%s702_s2 + $0x68] sm:$0xff]  ;;  %v62_v40 = vld [vmem:[%s702_s2 + $0x50] sm:$0xff]  ;;  %v63_v41 = vld [vmem:[%s702_s2 + $0x58] sm:$0xff] }
  0x13   :  { %105 = vmatpush.msra.mxu0 %v82_v22  ;;  %264 = vmatpush.msra.mxu3 %v257_v32  ;;  %v67_v42 = vld [vmem:[%s702_s2 + $0x78] sm:$0xff]  ;;  %v60_v44 = vld [vmem:[%s702_s2 + $0x40] sm:$0xff]  ;;  %v57_v47 = vld [vmem:[%s702_s2 + $0x28] sm:$0xff] }
  0x14   :  { %132 = vmatpush.msra.mxu1 %v77_v20  ;;  %158 = vmatpush.msra.mxu2 %v78_v21  ;;  %v59_v43 = vld [vmem:[%s702_s2 + $0x38] sm:$0xff]  ;;  %v64_v45 = vld [vmem:[%s702_s2 + $0x60] sm:$0xff]  ;;  %v61_v48 = vld [vmem:[%s702_s2 + $0x48] sm:$0xff] }
  0x15   :  { %106 = vmatpush.msra.mxu0 %v79_v27  ;;  %265 = vmatpush.msra.mxu3 %v254_v36  ;;  %v56_v46 = vld [vmem:[%s702_s2 + $0x20] sm:$0xff]  ;;  %v53_v49 = vld [vmem:[%s702_s2 + $0x8] sm:$0xff]  ;;  %v54_v50 = vld [vmem:[%s702_s2 + $0x10] sm:$0xff] }
  0x16   :  { %133 = vmatpush.msra.mxu1 %v74_v23  ;;  %159 = vmatpush.msra.mxu2 %v75_v24  ;;  %v49_v51 = vld [vmem:[#allocation2] sm:$0xff]  ;;  %v58_v52 = vld [vmem:[%s702_s2 + $0x30] sm:$0xff]  ;;  %v55_v53 = vld [vmem:[%s702_s2 + $0x18] sm:$0xff] }
  0x17   :  { %107 = vmatpush.msra.mxu0 %v76_v31  ;;  %v52_v54 = vld [vmem:[%s702_s2] sm:$0xff]  ;;  %v50_v55 = vld [vmem:[#allocation2 + $0x8] sm:$0xff]  ;;  %v51_v56 = vld [vmem:[#allocation2 + $0x10] sm:$0x3] }
  0x18   :  { %134 = vmatpush.msra.mxu1 %v71_v26  ;;  %160 = vmatpush.msra.mxu2 %v72_v28  ;;  %v251_v57 = vld [vmem:[#allocation4 + $0x120] sm:$0xff]  ;;  %v261_v58 = vld [vmem:[#allocation4 + $0x170] sm:$0xff]  ;;  %v643_v59 = vld [vmem:[#allocation4 + $0x178] sm:$0xff] }
  0x19   :  { %108 = vmatpush.msra.mxu0 %v73_v35  ;;  %266 = vmatpush.msra.mxu3 %v251_v57  ;;  %v248_v60 = vld [vmem:[#allocation4 + $0x108] sm:$0xff]  ;;  %v258_v61 = vld [vmem:[#allocation4 + $0x158] sm:$0xff]  ;;  %v646_v62 = vld [vmem:[#allocation4 + $0x160] sm:$0xff] }
  0x1a   :  { %135 = vmatpush.msra.mxu1 %v68_v33  ;;  %161 = vmatpush.msra.mxu2 %v69_v34  ;;  %v245_v63 = vld [vmem:[#allocation4 + $0xf0] sm:$0xff]  ;;  %v255_v0 = vld [vmem:[#allocation4 + $0x140] sm:$0xff]  ;;  %v648_v1 = vld [vmem:[#allocation4 + $0x148] sm:$0xff] }
  0x1b   :  { %109 = vmatpush.msra.mxu0 %v70_v39  ;;  %267 = vmatpush.msra.mxu3 %v248_v60  ;;  %v242_v2 = vld [vmem:[#allocation4 + $0xd8] sm:$0xff]  ;;  %v252_v3 = vld [vmem:[#allocation4 + $0x128] sm:$0xff]  ;;  %v652_v4 = vld [vmem:[#allocation4 + $0x130] sm:$0xff] }
  0x1c   :  { %136 = vmatpush.msra.mxu1 %v65_v37  ;;  %162 = vmatpush.msra.mxu2 %v66_v38  ;;  %v239_v5 = vld [vmem:[#allocation4 + $0xc0] sm:$0xff]  ;;  %v249_v6 = vld [vmem:[#allocation4 + $0x110] sm:$0xff]  ;;  %v655_v7 = vld [vmem:[#allocation4 + $0x118] sm:$0xff] }
  0x1d   :  { %110 = vmatpush.msra.mxu0 %v67_v42  ;;  %268 = vmatpush.msra.mxu3 %v245_v63  ;;  %v236_v8 = vld [vmem:[#allocation4 + $0xa8] sm:$0xff]  ;;  %v246_v9 = vld [vmem:[#allocation4 + $0xf8] sm:$0xff]  ;;  %v658_v10 = vld [vmem:[#allocation4 + $0x100] sm:$0xff] }
  0x1e   :  { %137 = vmatpush.msra.mxu1 %v62_v40  ;;  %163 = vmatpush.msra.mxu2 %v63_v41  ;;  %v233_v11 = vld [vmem:[#allocation4 + $0x90] sm:$0xff]  ;;  %v243_v12 = vld [vmem:[#allocation4 + $0xe0] sm:$0xff]  ;;  %v661_v13 = vld [vmem:[#allocation4 + $0xe8] sm:$0xff] }
  0x1f   :  { %111 = vmatpush.msra.mxu0 %v64_v45  ;;  %269 = vmatpush.msra.mxu3 %v242_v2  ;;  %v230_v14 = vld [vmem:[#allocation4 + $0x78] sm:$0xff]  ;;  %v240_v15 = vld [vmem:[#allocation4 + $0xc8] sm:$0xff]  ;;  %v664_v16 = vld [vmem:[#allocation4 + $0xd0] sm:$0xff] }
  0x20   :  { %138 = vmatpush.msra.mxu1 %v59_v43  ;;  %164 = vmatpush.msra.mxu2 %v60_v44  ;;  %v227_v17 = vld [vmem:[#allocation4 + $0x60] sm:$0xff]  ;;  %v237_v18 = vld [vmem:[#allocation4 + $0xb0] sm:$0xff]  ;;  %v238_v19 = vld [vmem:[#allocation4 + $0xb8] sm:$0xff] }
  0x21   :  { %112 = vmatpush.msra.mxu0 %v61_v48  ;;  %270 = vmatpush.msra.mxu3 %v239_v5  ;;  %v224_v20 = vld [vmem:[#allocation4 + $0x48] sm:$0xff]  ;;  %v234_v21 = vld [vmem:[#allocation4 + $0x98] sm:$0xff]  ;;  %v235_v22 = vld [vmem:[#allocation4 + $0xa0] sm:$0xff] }
  0x22   :  { %139 = vmatpush.msra.mxu1 %v56_v46  ;;  %165 = vmatpush.msra.mxu2 %v57_v47  ;;  %v221_v23 = vld [vmem:[#allocation4 + $0x30] sm:$0xff]  ;;  %v231_v24 = vld [vmem:[#allocation4 + $0x80] sm:$0xff]  ;;  %v232_v26 = vld [vmem:[#allocation4 + $0x88] sm:$0xff] }
  0x23   :  { %113 = vmatpush.msra.mxu0 %v58_v52  ;;  %271 = vmatpush.msra.mxu3 %v236_v8  ;;  %v218_v27 = vld [vmem:[#allocation4 + $0x18] sm:$0xff]  ;;  %v228_v28 = vld [vmem:[#allocation4 + $0x68] sm:$0xff]  ;;  %v229_v30 = vld [vmem:[#allocation4 + $0x70] sm:$0xff] }
  0x24   :  { %140 = vmatpush.msra.mxu1 %v53_v49  ;;  %166 = vmatpush.msra.mxu2 %v54_v50  ;;  %v215_v31 = vld [vmem:[#allocation4] sm:$0xff]  ;;  %v225_v32 = vld [vmem:[#allocation4 + $0x50] sm:$0xff]  ;;  %v226_v33 = vld [vmem:[#allocation4 + $0x58] sm:$0xff] }
  0x25   :  { %141 = vmatmul.f32.vlgmr.msra.gmra.mxu1 %v49_v51  ;;  %167 = vmatmul.f32.vlgmr.msra.gmra.mxu2 %v49_v51  ;;  %v222_v34 = vld [vmem:[#allocation4 + $0x38] sm:$0xff]  ;;  %v223_v35 = vld [vmem:[#allocation4 + $0x40] sm:$0xff]  ;;  %v220_v37 = vld [vmem:[#allocation4 + $0x28] sm:$0xff] }
  0x26   :  { %114 = vmatpush.msra.mxu0 %v55_v53  ;;  %314 = vmatpush.msrb.mxu1 %v643_v59  ;;  %v219_v36 = vld [vmem:[#allocation4 + $0x20] sm:$0xff]  ;;  %v216_v38 = vld [vmem:[#allocation4 + $0x8] sm:$0xff]  ;;  %v217_v39 = vld [vmem:[#allocation4 + $0x10] sm:$0xff] }
  0x27   :  { %381 = vmatpush.msrb.mxu2 %v261_v58  ;;  %272 = vmatpush.msra.mxu3 %v233_v11  ;;  %v417_v52 = vld [vmem:[%s703_s3] ss:$0 sm:$0xff] }
  0x28   :  { %115 = vmatpush.msra.mxu0 %v52_v54  ;;  %315 = vmatpush.msrb.mxu1 %v646_v62 }
  0x29   :  { %116 = vmatmul.f32.vlgmr.msra.gmra.mxu0 %v49_v51  ;;  %382 = vmatpush.msrb.mxu2 %v258_v61 }
  0x2a   :  { %288 = vmatpush.msrb.mxu0 %v261_v58  ;;  %316 = vmatpush.msrb.mxu1 %v648_v1 }
  0x2b   :  { %383 = vmatpush.msrb.mxu2 %v255_v0  ;;  %273 = vmatpush.msra.mxu3 %v230_v14 }
  0x2c   :  { %289 = vmatpush.msrb.mxu0 %v258_v61  ;;  %317 = vmatpush.msrb.mxu1 %v652_v4 }
  0x2d   :  { %144 = vmatmul.f32.gmra.mxu1 %v50_v55  ;;  %170 = vmatmul.f32.gmra.mxu2 %v50_v55 }
  0x2e   :  { %290 = vmatpush.msrb.mxu0 %v255_v0  ;;  %384 = vmatpush.msrb.mxu2 %v252_v3 }
  0x2f   :  { %318 = vmatpush.msrb.mxu1 %v655_v7  ;;  %274 = vmatpush.msra.mxu3 %v227_v17 }
  0x30   :  { %291 = vmatpush.msrb.mxu0 %v252_v3  ;;  %385 = vmatpush.msrb.mxu2 %v249_v6 }
  0x31   :  { %119 = vmatmul.f32.gmra.mxu0 %v50_v55  ;;  %319 = vmatpush.msrb.mxu1 %v658_v10 }
  0x32   :  { %292 = vmatpush.msrb.mxu0 %v249_v6  ;;  %386 = vmatpush.msrb.mxu2 %v246_v9 }
  0x33   :  { %320 = vmatpush.msrb.mxu1 %v661_v13  ;;  %275 = vmatpush.msra.mxu3 %v224_v20 }
  0x34   :  { %293 = vmatpush.msrb.mxu0 %v246_v9  ;;  %387 = vmatpush.msrb.mxu2 %v243_v12 }
  0x35   :  { %147 = vmatmul.f32.gmra.mxu1 %v51_v56  ;;  %173 = vmatmul.f32.gmra.mxu2 %v51_v56 }
  0x36   :  { %294 = vmatpush.msrb.mxu0 %v243_v12  ;;  %321 = vmatpush.msrb.mxu1 %v664_v16 }
  0x37   :  { %388 = vmatpush.msrb.mxu2 %v240_v15  ;;  %276 = vmatpush.msra.mxu3 %v221_v23 }
  0x38   :  { %295 = vmatpush.msrb.mxu0 %v240_v15  ;;  %322 = vmatpush.msrb.mxu1 %v238_v19 }
  0x39   :  { %122 = vmatmul.f32.gmra.mxu0 %v51_v56  ;;  %389 = vmatpush.msrb.mxu2 %v237_v18 }
  0x3a   :  { %296 = vmatpush.msrb.mxu0 %v237_v18  ;;  %323 = vmatpush.msrb.mxu1 %v235_v22 }
  0x3b   :  { %390 = vmatpush.msrb.mxu2 %v234_v21  ;;  %277 = vmatpush.msra.mxu3 %v218_v27 }
  0x3c   :  { %297 = vmatpush.msrb.mxu0 %v234_v21  ;;  %324 = vmatpush.msrb.mxu1 %v232_v26  ;;  %v418_v21 = vld [vmem:[%s705_s5] ss:$0 sm:$0xff] }
  0x3d   :  { %391 = vmatpush.msrb.mxu2 %v231_v24  ;;  %278 = vmatpush.msra.mxu3 %v215_v31 }
  0x3e   :  { %298 = vmatpush.msrb.mxu0 %v231_v24  ;;  %325 = vmatpush.msrb.mxu1 %v229_v30 }
  0x3f   :  { %392 = vmatpush.msrb.mxu2 %v228_v28  ;;  %397 = vmatpush.msrb.mxu3 %v643_v59 }
  0x40   :  { %299 = vmatpush.msrb.mxu0 %v228_v28  ;;  %326 = vmatpush.msrb.mxu1 %v226_v33 }
  0x41   :  { %393 = vmatpush.msrb.mxu2 %v225_v32  ;;  %398 = vmatpush.msrb.mxu3 %v646_v62 }
  0x42   :  { %300 = vmatpush.msrb.mxu0 %v225_v32  ;;  %327 = vmatpush.msrb.mxu1 %v223_v35 }
  0x43   :  { %394 = vmatpush.msrb.mxu2 %v222_v34  ;;  %399 = vmatpush.msrb.mxu3 %v648_v1 }
  0x44   :  { %301 = vmatpush.msrb.mxu0 %v222_v34  ;;  %328 = vmatpush.msrb.mxu1 %v220_v37 }
  0x45   :  { %395 = vmatpush.msrb.mxu2 %v219_v36  ;;  %400 = vmatpush.msrb.mxu3 %v652_v4 }
  0x46   :  { %302 = vmatpush.msrb.mxu0 %v219_v36  ;;  %329 = vmatpush.msrb.mxu1 %v217_v39 }
  0x47   :  { %396 = vmatpush.msrb.mxu2 %v216_v38  ;;  %401 = vmatpush.msrb.mxu3 %v655_v7 }
  0x48   :  { %303 = vmatpush.msrb.mxu0 %v216_v38 }
  0x49   :  { %402 = vmatpush.msrb.mxu3 %v658_v10 }
  0x4b   :  { %403 = vmatpush.msrb.mxu3 %v661_v13 }
  0x4d   :  { %404 = vmatpush.msrb.mxu3 %v664_v16 }
  0x4f   :  { %405 = vmatpush.msrb.mxu3 %v238_v19 }
  0x51   :  { %406 = vmatpush.msrb.mxu3 %v235_v22 }
  0x53   :  { %407 = vmatpush.msrb.mxu3 %v232_v26  ;;  %v369_v26 = vstv %s700_s0 }
  0x55   :  { %408 = vmatpush.msrb.mxu3 %v229_v30 }
  0x57   :  { %409 = vmatpush.msrb.mxu3 %v226_v33 }
  0x59   :  { %410 = vmatpush.msrb.mxu3 %v223_v35 }
  0x5b   :  { %411 = vmatpush.msrb.mxu3 %v220_v37 }
  0x5d   :  { %412 = vmatpush.msrb.mxu3 %v217_v39 }
  0xa2   :  { %v142_v40 = vpop.f32.mrf.mxu1 }
  0xa3   :  { %v181_v45 = vrot.slane %v142_v40, 1 }
  0xa6   :  { %v117_v42 = vpop.f32.mrf.mxu0 }
  0xa8   :  { %v168_v41 = vpop.f32.mrf.mxu2 }
  0xa9   :  { %v194_v49 = vrot.slane %v168_v41, 2 }
  0xaa   :  { %v145_v43 = vpop.f32.mrf.mxu1 }
  0xab   :  { %v182_v44 = vrot.slane %v145_v43, 1 }
  0xad   :  { %v183_v46 = vsel %vm180_vm0, %v181_v45, %v182_v44 }
  0xae   :  { %v120_v48 = vpop.f32.mrf.mxu0  ;;  %v188_v51 = vadd.f32 %v183_v46, %v117_v42 }
  0xb0   :  { %v171_v47 = vpop.f32.mrf.mxu2 }
  0xb1   :  { %v195_v50 = vrot.slane %v171_v47, 2 }
  0xb2   :  { %v148_v53 = vpop.f32.mrf.mxu1 }
  0xb3   :  { %v196_v54 = vsel %vm193_vm1, %v194_v49, %v195_v50  ;;  %v184_v55 = vrot.slane %v148_v53, 1 }
  0xb4   :  { %v201_v56 = vadd.f32 %v196_v54, %v188_v51 }
  0xb5   :  { %v185_v58 = vsel %vm180_vm0, %v182_v44, %v184_v55 }
  0xb6   :  { %v206_v57 = vadd.f32 %v417_v52, %v201_v56  ;;  %v123_v61 = vpop.f32.mrf.mxu0  ;;  %v189_v63 = vadd.f32 %v185_v58, %v120_v48 }
  0xb8   :  { %v208_v59 = vmax.f32 %v206_v57, 0.0  ;;  %v174_v60 = vpop.f32.mrf.mxu2 }
  0xb9   :  { %v197_v62 = vrot.slane %v174_v60, 2 }
  0xba   :  { %210 = vst [vmem:[#allocation2 + $0x1] sm:$0xff] %v208_v59 }
  0xbb   :  { %v198_v0 = vsel %vm193_vm1, %v195_v50, %v197_v62 }
  0xbc   :  { %v202_v1 = vadd.f32 %v198_v0, %v189_v63 }
  0xbe   :  { %v207_v2 = vadd.f32 %v417_v52, %v202_v1 }
  0xc0   :  { %v209_v3 = vmax.f32 %v207_v2, 0.0 }
  0xc1   :  { %v212_v4 = vld [vmem:[#allocation2] sm:$0xff] }
  0xc2   :  { %211 = vst [vmem:[#allocation2 + $0x9] sm:$0xff] %v209_v3  ;;  %279 = vmatmul.f32.vlgmr.msra.gmra.mxu3 %v212_v4  ;;  %304 = vmatmul.f32.vlgmr.msrb.gmra.mxu0 %v212_v4 }
  0xc3   :  { %330 = vmatmul.f32.vlgmr.msrb.gmra.mxu1 %v212_v4 }
  0xc9   :  { %v213_v5 = vld [vmem:[#allocation2 + $0x8] sm:$0xff]  ;;  %v214_v6 = vld [vmem:[#allocation2 + $0x10] sm:$0x3] }
  0xca   :  { %282 = vmatmul.f32.gmra.mxu3 %v213_v5  ;;  %307 = vmatmul.f32.vlgmr.msrb.gmra.mxu2 %v213_v5 }
  0xd2   :  { %285 = vmatmul.f32.gmra.mxu3 %v214_v6  ;;  %310 = vmatmul.f32.gmra.mxu2 %v214_v6 }
  0xda   :  { %333 = vmatmul.f32.vlgmr.msrb.gmra.mxu3 %v213_v5 }
  0xe2   :  { %336 = vmatmul.f32.gmra.mxu3 %v214_v6 }
 0x13f   :  { %v305_v11 = vpop.f32.mrf.mxu0 }
 0x140   :  { %v343_v13 = vrot.slane %v305_v11, 1  ;;  %v331_v14 = vpop.f32.mrf.mxu1 }
 0x141   :  { %v355_v18 = vrot.slane %v331_v14, 2 }
 0x145   :  { %v280_v7 = vpop.f32.mrf.mxu3 }
 0x14d   :  { %v283_v8 = vpop.f32.mrf.mxu3  ;;  %v308_v9 = vpop.f32.mrf.mxu2 }
 0x14e   :  { %v344_v12 = vrot.slane %v308_v9, 1 }
 0x150   :  { %v345_v15 = vsel %vm180_vm0, %v343_v13, %v344_v12 }
 0x151   :  { %v350_v20 = vadd.f32 %v345_v15, %v280_v7 }
 0x155   :  { %v286_v10 = vpop.f32.mrf.mxu3  ;;  %v311_v16 = vpop.f32.mrf.mxu2 }
 0x156   :  { %v346_v22 = vrot.slane %v311_v16, 1 }
 0x158   :  { %v347_v28 = vsel %vm180_vm0, %v344_v12, %v346_v22 }
 0x159   :  { %v351_v33 = vadd.f32 %v347_v28, %v283_v8 }
 0x15d   :  { %v334_v17 = vpop.f32.mrf.mxu3 }
 0x15e   :  { %v356_v19 = vrot.slane %v334_v17, 2 }
 0x160   :  { %v357_v23 = vsel %vm193_vm1, %v355_v18, %v356_v19 }
 0x161   :  { %v362_v24 = vadd.f32 %v357_v23, %v350_v20 }
 0x163   :  { %v367_v27 = vadd.f32 %v418_v21, %v362_v24 }
 0x165   :  { %v370_v30 = vmul.f32 %v369_v26, %v367_v27  ;;  %v337_v31 = vpop.f32.mrf.mxu3 }
 0x166   :  { %v358_v32 = vrot.slane %v337_v31, 2 }
 0x167   :  { %v372_v34 = vadd.f32 %v370_v30, %v562_v25 }
 0x168   :  { %v359_v35 = vsel %vm193_vm1, %v356_v19, %v358_v32 }
 0x169   :  { %374 = vst [vmem:[%s706_s6] sm:$0xff] %v372_v34  ;;  %v363_v36 = vadd.f32 %v359_v35, %v351_v33 }
 0x16b   :  { %v368_v37 = vadd.f32 %v418_v21, %v363_v36 }
 0x16d   :  { %v371_v38 = vmul.f32 %v369_v26, %v368_v37 }
 0x16f   :  { %v373_v39 = vadd.f32 %v371_v38, %v577_v29 }
 0x171   :  { %375 = vst [vmem:[%s706_s6 + $0x8] sm:$0xff] %v373_v39 }
 0x172   :  { %380 = vsyncpa [#allocation5], 1 }

</bundles_post_ra>
